<compile_context>
chip_gen: v7x
topology: tpu7x:2x2x1
jax: 0.10.0
libtpu: 0.0.40
codegen_flags: <defaults>
</compile_context>

<pallas_src>
import functools

import jax
import jax.numpy as jnp
from jax.experimental import pallas as pl
from jax.experimental.pallas import tpu as pltpu

LN_EPS = 1e-5   # torch.nn.LayerNorm default
FOLD = 16       # original rows packed side-by-side on the lane axis


# --------------------------------------------------------------------------- #
# Kernel
# --------------------------------------------------------------------------- #
def _decoder_kernel(x_ref, w1_ref, b1_ref, beta_ref, w2_ref, b2_ref,
                    gsum_ref, gbc_ref, o_ref):
    """Fused Linear1 -> LayerNorm -> ReLU -> Linear2 on one folded row tile.

    x_ref:    (tile, FOLD*in)        activations, FOLD rows per sublane row
    w1_ref:   (FOLD*in, FOLD*hid)    kron(I, W1 - colmean(W1))  (pre-centered)
    b1_ref:   (1, FOLD*hid)          centered bias, f32
    beta_ref: (1, FOLD*hid)          LN beta, f32
    w2_ref:   (FOLD*hid, FOLD*out)   kron(I, W2)
    b2_ref:   (1, FOLD*out)          f32
    gsum_ref: (FOLD*hid, FOLD)       per-group mean-of-squares compressor, f32
    gbc_ref:  (FOLD, FOLD*hid)       group broadcast with gamma folded in, f32
    o_ref:    (tile, FOLD*out)
    """
    # Linear1 (MXU, f32 accumulation). Mean removal is folded into the weights,
    # so `c` is already the centered pre-LayerNorm activation.
    c = jnp.dot(x_ref[...], w1_ref[...],
                preferred_element_type=jnp.float32) + b1_ref[...]

    # Per-original-row variance: compress each 32-lane group on the MXU
    # (avoids any cross-lane shuffle), rsqrt on the tiny (tile, FOLD) array.
    var = jnp.dot(c * c, gsum_ref[...], preferred_element_type=jnp.float32)
    inv = jax.lax.rsqrt(var + LN_EPS)                       # (tile, FOLD)

    # Broadcast 1/std back over each lane group; LN gamma is folded into gbc.
    scale = jnp.dot(inv, gbc_ref[...], preferred_element_type=jnp.float32)

    # LN affine + ReLU (VPU, f32).
    h = jnp.maximum(c * scale + beta_ref[...], 0.0)

    # Linear2 (MXU). Cast to the weight dtype so bf16 weights hit the
    # bf16-native MXU path (no-op when the weights are f32).
    out = jnp.dot(h.astype(w2_ref.dtype), w2_ref[...],
                  preferred_element_type=jnp.float32) + b2_ref[...]
    o_ref[...] = out.astype(o_ref.dtype)


# --------------------------------------------------------------------------- #
# Tiling heuristics
# --------------------------------------------------------------------------- #
def _round_up(n, m):
    return ((n + m - 1) // m) * m


def _sublane_multiple(itemsize):
    # f32 -> 8, bf16 -> 16, int8/fp8 -> 32 (sublane packing multiples).
    return {4: 8, 2: 16, 1: 32}.get(itemsize, 8)


def _pick_tile(rows_f, req_rows_f, in_w, hid_w, out_w, act_bytes, w_bytes):
    """Pick the folded-row tile: as large as fits a conservative VMEM budget,
    capped so big inputs still give >=4 grid steps (v7x megacore), but never
    shrunk below ~512 KiB of streamed x per step."""
    mult = _sublane_multiple(act_bytes)
    budget = 20 * 1024 * 1024   # well inside the 32 MiB scoped-VMEM limit

    def footprint(t):
        io = 2 * t * (in_w + out_w) * act_bytes              # double-buffered x/out
        tmp = 4 * t * hid_w * 4 + 2 * t * 128 * 4            # f32 intermediates
        wts = (2 * (in_w * hid_w + hid_w * out_w + 2 * hid_w) * w_bytes
               + 2 * (2 * hid_w * FOLD + hid_w + out_w) * 4)  # resident params
        return io + tmp + wts

    tile = max(mult, _round_up(req_rows_f, mult))
    while tile > mult and footprint(tile) > budget:
        tile = max(mult, _round_up(tile // 2, mult))

    # v7x has 2 TensorCores; "parallel" sharding only helps with >=2 steps.
    # Aim for >=4 steps on large inputs, keeping each step >= ~512 KiB of x.
    min_step = _round_up(max(mult, (512 * 1024) // max(1, in_w * act_bytes)),
                         mult)
    if rows_f >= 2 * min_step:
        tile = min(tile, max(min_step, _round_up(pl.cdiv(rows_f, 4), mult)))

    # If everything fits in a single block, use the exact folded row count
    # (block dim == full array dim is always legal, no padding needed).
    return rows_f if rows_f <= tile else tile


# --------------------------------------------------------------------------- #
# Wrapper
# --------------------------------------------------------------------------- #
@functools.partial(jax.jit, static_argnames=("row_tile",))
def decoder_forward(x, w1, b1, gamma, beta, w2, b2, *, row_tile=None):
    """y = Linear2(ReLU(LayerNorm(Linear1(x)))),  x: [..., in] -> [..., out].

    Weights are stored transposed ([in, out]); b1/gamma/beta/b2 are [1, n].
    `row_tile` is in original-row units (default: ~1 MiB of x per grid step).
    """
    in_size, hidden = w1.shape
    out_size = w2.shape[1]
    act_bytes = x.dtype.itemsize

    lead_shape = x.shape[:-1]
    rows = 1
    for d in lead_shape:
        rows *= d

    # ---- fold FOLD consecutive rows onto the lane axis (pure-view reshape) ---
    x2d = x.reshape(rows, in_size)
    pad_rows = (-rows) % FOLD
    if pad_rows:
        # Only when rows % 16 != 0 (typical batch*seq sizes are multiples of
        # 16, making this a no-op).  Padded rows stay finite through LN
        # (var + eps > 0) and are sliced off below.
        x2d = jnp.pad(x2d, ((0, pad_rows), (0, 0)))
    padded_rows = rows + pad_rows
    rows_f = padded_rows // FOLD
    in_w, hid_w, out_w = FOLD * in_size, FOLD * hidden, FOLD * out_size
    x_f = x2d.reshape(rows_f, in_w)

    # ---- fold the parameters (tiny; would be precomputed once in practice) ---
    f32 = jnp.float32
    eye = jnp.eye(FOLD, dtype=f32)
    # Fold LayerNorm's mean removal into Linear1: the first matmul directly
    # produces centered activations (saves the in-kernel mean reduction).
    w1c = w1.astype(f32) - jnp.mean(w1.astype(f32), axis=1, keepdims=True)
    b1c = b1.astype(f32) - jnp.mean(b1.astype(f32))
    w1b = jnp.kron(eye, w1c).astype(w1.dtype)                 # (FOLD*in, FOLD*hid)
    w2b = jnp.kron(eye, w2.astype(f32)).astype(w2.dtype)      # (FOLD*hid, FOLD*out)
    b1t = jnp.tile(b1c, (1, FOLD))                            # f32 (1, FOLD*hid)
    betat = jnp.tile(beta.astype(f32), (1, FOLD))             # f32 (1, FOLD*hid)
    b2t = jnp.tile(b2.astype(f32), (1, FOLD))                 # f32 (1, FOLD*out)
    # variance = (c*c) @ gsum ;  1/std broadcast (gamma folded in) = inv @ gbc
    gsum = jnp.kron(eye, jnp.full((hidden, 1), 1.0 / hidden, f32))   # (FOLD*hid, FOLD)
    gbc = (jnp.kron(eye, jnp.ones((1, hidden), f32))
           * jnp.tile(gamma.astype(f32), (1, FOLD)))                 # (FOLD, FOLD*hid)

    # ---- tiling -------------------------------------------------------------
    req = row_tile
    if req is None:
        # Default: each grid step streams >= ~1 MiB of x (≈16K rows f32,
        # ≈32K rows bf16); the VMEM budget loop is the binding constraint.
        req = max(FOLD * 8, (1 << 20) // max(1, in_size * act_bytes))
    tile_f = _pick_tile(rows_f, max(1, req // FOLD), in_w, hid_w, out_w,
                        act_bytes, w1b.dtype.itemsize)
    grid = (pl.cdiv(rows_f, tile_f),)

    param_bytes = (w1b.size * w1b.dtype.itemsize + w2b.size * w2b.dtype.itemsize
                   + (b1t.size + betat.size + b2t.size + gsum.size + gbc.size) * 4)
    cost = pl.CostEstimate(
        flops=2 * rows_f * (in_w * hid_w + 2 * hid_w * FOLD + hid_w * out_w),
        transcendentals=rows_f * FOLD,
        bytes_accessed=(rows_f * (in_w + out_w) * act_bytes + param_bytes))

    const = lambda i: (0, 0)
    out_f = pl.pallas_call(
        _decoder_kernel,
        out_shape=jax.ShapeDtypeStruct((rows_f, out_w), x.dtype),
        grid_spec=pltpu.PrefetchScalarGridSpec(
            num_scalar_prefetch=0,
            grid=grid,
            in_specs=[
                pl.BlockSpec((tile_f, in_w), lambda i: (i, 0)),  # x (streamed)
                # Parameters have constant index maps -> resident in VMEM.
                pl.BlockSpec((in_w, hid_w), const),              # kron(I, W1c)
                pl.BlockSpec((1, hid_w), const),                 # centered b1
                pl.BlockSpec((1, hid_w), const),                 # LN beta
                pl.BlockSpec((hid_w, out_w), const),             # kron(I, W2)
                pl.BlockSpec((1, out_w), const),                 # b2
                pl.BlockSpec((hid_w, FOLD), const),              # group compressor
                pl.BlockSpec((FOLD, hid_w), const),              # broadcast * gamma
            ],
            out_specs=pl.BlockSpec((tile_f, out_w), lambda i: (i, 0)),
        ),
        compiler_params=pltpu.CompilerParams(
            dimension_semantics=("parallel",),    # megacore-shard row tiles (v7x)
            vmem_limit_bytes=32 * 1024 * 1024),   # safe on v5e/v6e/v7x
        cost_estimate=cost,
    )(x_f, w1b, b1t, betat, w2b, b2t, gsum, gbc)

    out2d = out_f.reshape(padded_rows, out_size)
    if pad_rows:
        out2d = out2d[:rows]
    return out2d.reshape(*lead_shape, out_size)


# --------------------------------------------------------------------------- #
# Parameters / reference
# --------------------------------------------------------------------------- #
def init_decoder_params(key, input_size, hidden_size, output_size,
                        dtype=jnp.float32):
    """torch-like init (uniform fan-in for Linear, ones/zeros for LayerNorm).
    Weights stored transposed: [in, out]; 1-D params stored as [1, n]."""
    k1, k2, k3, k4 = jax.random.split(key, 4)
    bound1 = 1.0 / (input_size ** 0.5)
    bound2 = 1.0 / (hidden_size ** 0.5)
    w1 = jax.random.uniform(k1, (input_size, hidden_size), dtype,
                            minval=-bound1, maxval=bound1)
    b1 = jax.random.uniform(k2, (1, hidden_size), dtype,
                            minval=-bound1, maxval=bound1)
    gamma = jnp.ones((1, hidden_size), dtype)
    beta = jnp.zeros((1, hidden_size), dtype)
    w2 = jax.random.uniform(k3, (hidden_size, output_size), dtype,
                            minval=-bound2, maxval=bound2)
    b2 = jax.random.uniform(k4, (1, output_size), dtype,
                            minval=-bound2, maxval=bound2)
    return w1, b1, gamma, beta, w2, b2


def _reference_forward(x, w1, b1, gamma, beta, w2, b2):
    h = x @ w1 + b1
    mean = jnp.mean(h, axis=-1, keepdims=True)
    var = jnp.mean((h - mean) ** 2, axis=-1, keepdims=True)
    h = (h - mean) / jnp.sqrt(var + LN_EPS) * gamma + beta
    h = jnp.maximum(h, 0.0)
    return h @ w2 + b2


# --------------------------------------------------------------------------- #
# Self-test
# --------------------------------------------------------------------------- #
if __name__ == "__main__":
    # Decoder(input_size=16, hidden_size=32, output_size=8)
    input_size, hidden_size, output_size = 16, 32, 8

    key = jax.random.PRNGKey(0)
    kx1, kx2, kx3, kx4, kp = jax.random.split(key, 5)
    params = init_decoder_params(kp, input_size, hidden_size, output_size)

    # f32 tolerances: slightly looser than a same-order reference because the
    # LN mean is folded into W1 and the variance reduce goes through the MXU.
    ATOL = RTOL = 3e-5

    # 1) Small: batch=2, seq=8 (single folded block of 1 row).
    x = jax.random.normal(kx1, (2, 8, input_size), jnp.float32)
    y = jax.block_until_ready(decoder_forward(x, *params))
    assert y.shape == (2, 8, output_size)
    assert jnp.allclose(y, _reference_forward(x, *params),
                        atol=ATOL, rtol=RTOL), "mismatch (small)"

    # 2) Larger, default tile (single lane-dense block; rows % 16 == 0).
    x_big = jax.random.normal(kx2, (4, 300, input_size), jnp.float32)
    y_big = jax.block_until_ready(decoder_forward(x_big, *params))
    assert y_big.shape == (4, 300, output_size)
    assert jnp.allclose(y_big, _reference_forward(x_big, *params),
                        atol=ATOL, rtol=RTOL), "mismatch (large)"

    # 3) Multi-step grid with a ragged last block (no tile-multiple padding).
    y_rag = jax.block_until_ready(decoder_forward(x_big, *params, row_tile=256))
    assert jnp.allclose(y_rag, _reference_forward(x_big, *params),
                        atol=ATOL, rtol=RTOL), "mismatch (ragged grid)"

    # 4) rows not a multiple of the fold factor (21 rows -> padded to 32).
    x_odd = jax.random.normal(kx3, (3, 7, input_size), jnp.float32)
    y_odd = jax.block_until_ready(decoder_forward(x_odd, *params))
    assert y_odd.shape == (3, 7, output_size)
    assert jnp.allclose(y_odd, _reference_forward(x_odd, *params),
                        atol=ATOL, rtol=RTOL), "mismatch (row remainder)"

    # 5) bf16 I/O path (halves HBM traffic on the bandwidth-bound case).
    x_bf = jax.random.normal(kx4, (4, 512, input_size), jnp.float32)
    params_bf = tuple(p.astype(jnp.bfloat16) for p in params)
    y_bf = jax.block_until_ready(
        decoder_forward(x_bf.astype(jnp.bfloat16), *params_bf))
    assert y_bf.dtype == jnp.bfloat16
    assert jnp.allclose(y_bf.astype(jnp.float32),
                        _reference_forward(x_bf, *params),
                        atol=5e-2, rtol=5e-2), "mismatch (bf16)"

    print("KERNEL_OK")
</pallas_src>

<mosaic_0001>
module attributes {stable_mosaic.version = 11 : i64} {
  func.func @_decoder_kernel(%arg0: i32, %arg1: memref<1x256xf32, #tpu.memory_space<vmem>>, %arg2: memref<256x512xf32, #tpu.memory_space<vmem>>, %arg3: memref<1x512xf32, #tpu.memory_space<vmem>>, %arg4: memref<1x512xf32, #tpu.memory_space<vmem>>, %arg5: memref<512x128xf32, #tpu.memory_space<vmem>>, %arg6: memref<1x128xf32, #tpu.memory_space<vmem>>, %arg7: memref<512x16xf32, #tpu.memory_space<vmem>>, %arg8: memref<16x512xf32, #tpu.memory_space<vmem>>, %arg9: memref<1x128xf32, #tpu.memory_space<vmem>>) attributes {dimension_semantics = [#tpu.dimension_semantics<parallel>], iteration_bounds = array<i64: 1>, scalar_prefetch = 0 : i64, scratch_operands = 0 : i64, tpu.core_type = #tpu.core_type<tc>, window_params = [{transform_indices = @transform_0, window_bounds = array<i64: 1, 256>}, {pipeline_mode = #tpu.pipeline_mode<synchronous>, transform_indices = @transform_1, window_bounds = array<i64: 256, 512>}, {pipeline_mode = #tpu.pipeline_mode<synchronous>, transform_indices = @transform_2, window_bounds = array<i64: 1, 512>}, {pipeline_mode = #tpu.pipeline_mode<synchronous>, transform_indices = @transform_3, window_bounds = array<i64: 1, 512>}, {pipeline_mode = #tpu.pipeline_mode<synchronous>, transform_indices = @transform_4, window_bounds = array<i64: 512, 128>}, {pipeline_mode = #tpu.pipeline_mode<synchronous>, transform_indices = @transform_5, window_bounds = array<i64: 1, 128>}, {pipeline_mode = #tpu.pipeline_mode<synchronous>, transform_indices = @transform_6, window_bounds = array<i64: 512, 16>}, {pipeline_mode = #tpu.pipeline_mode<synchronous>, transform_indices = @transform_7, window_bounds = array<i64: 16, 512>}, {transform_indices = @transform_8, window_bounds = array<i64: 1, 128>}]} {
    %c0 = arith.constant 0 : index
    %c0_0 = arith.constant 0 : index
    %0 = vector.load %arg1[%c0, %c0_0] : memref<1x256xf32, #tpu.memory_space<vmem>>, vector<1x256xf32>
    %c0_1 = arith.constant 0 : index
    %c0_2 = arith.constant 0 : index
    %1 = vector.load %arg2[%c0_1, %c0_2] : memref<256x512xf32, #tpu.memory_space<vmem>>, vector<256x512xf32>
    %cst = arith.constant dense<0.000000e+00> : vector<1x512xf32>
    %2 = tpu.matmul %0, %1, %cst {dimension_numbers = #tpu.dot_dimension_numbers<[1], [0], [0], [1], [0, 0, 1, 1], [], []>} : vector<1x256xf32>, vector<256x512xf32>, vector<1x512xf32> -> vector<1x512xf32>
    %c0_3 = arith.constant 0 : index
    %c0_4 = arith.constant 0 : index
    %3 = vector.load %arg3[%c0_3, %c0_4] : memref<1x512xf32, #tpu.memory_space<vmem>>, vector<1x512xf32>
    %4 = arith.addf %2, %3 : vector<1x512xf32>
    %5 = arith.mulf %4, %4 : vector<1x512xf32>
    %c0_5 = arith.constant 0 : index
    %c0_6 = arith.constant 0 : index
    %6 = vector.load %arg7[%c0_5, %c0_6] : memref<512x16xf32, #tpu.memory_space<vmem>>, vector<512x16xf32>
    %cst_7 = arith.constant dense<0.000000e+00> : vector<1x16xf32>
    %7 = tpu.matmul %5, %6, %cst_7 {dimension_numbers = #tpu.dot_dimension_numbers<[1], [0], [0], [1], [0, 0, 1, 1], [], []>} : vector<1x512xf32>, vector<512x16xf32>, vector<1x16xf32> -> vector<1x16xf32>
    %cst_8 = arith.constant 9.99999974E-6 : f32
    %8 = vector.broadcast %cst_8 : f32 to vector<1x16xf32>
    %9 = arith.addf %7, %8 : vector<1x16xf32>
    %10 = math.rsqrt %9 : vector<1x16xf32>
    %c0_9 = arith.constant 0 : index
    %c0_10 = arith.constant 0 : index
    %11 = vector.load %arg8[%c0_9, %c0_10] : memref<16x512xf32, #tpu.memory_space<vmem>>, vector<16x512xf32>
    %cst_11 = arith.constant dense<0.000000e+00> : vector<1x512xf32>
    %12 = tpu.matmul %10, %11, %cst_11 {dimension_numbers = #tpu.dot_dimension_numbers<[1], [0], [0], [1], [0, 0, 1, 1], [], []>} : vector<1x16xf32>, vector<16x512xf32>, vector<1x512xf32> -> vector<1x512xf32>
    %13 = arith.mulf %4, %12 : vector<1x512xf32>
    %c0_12 = arith.constant 0 : index
    %c0_13 = arith.constant 0 : index
    %14 = vector.load %arg4[%c0_12, %c0_13] : memref<1x512xf32, #tpu.memory_space<vmem>>, vector<1x512xf32>
    %15 = arith.addf %13, %14 : vector<1x512xf32>
    %cst_14 = arith.constant 0.000000e+00 : f32
    %16 = vector.broadcast %cst_14 : f32 to vector<1x512xf32>
    %17 = arith.maximumf %15, %16 : vector<1x512xf32>
    %c0_15 = arith.constant 0 : index
    %c0_16 = arith.constant 0 : index
    %18 = vector.load %arg5[%c0_15, %c0_16] : memref<512x128xf32, #tpu.memory_space<vmem>>, vector<512x128xf32>
    %cst_17 = arith.constant dense<0.000000e+00> : vector<1x128xf32>
    %19 = tpu.matmul %17, %18, %cst_17 {dimension_numbers = #tpu.dot_dimension_numbers<[1], [0], [0], [1], [0, 0, 1, 1], [], []>} : vector<1x512xf32>, vector<512x128xf32>, vector<1x128xf32> -> vector<1x128xf32>
    %c0_18 = arith.constant 0 : index
    %c0_19 = arith.constant 0 : index
    %20 = vector.load %arg6[%c0_18, %c0_19] : memref<1x128xf32, #tpu.memory_space<vmem>>, vector<1x128xf32>
    %21 = arith.addf %19, %20 : vector<1x128xf32>
    %c0_20 = arith.constant 0 : index
    %c0_21 = arith.constant 0 : index
    %22 = vector.load %arg9[%c0_20, %c0_21] : memref<1x128xf32, #tpu.memory_space<vmem>>, vector<1x128xf32>
    tpu.vector_store %arg9[%c0_20, %c0_21], %21 {strides = array<i32>} : memref<1x128xf32, #tpu.memory_space<vmem>>, vector<1x128xf32>,
    return
  }
  func.func @transform_0(%arg0: i32) -> (i32, i32) {
    %c0_i32 = arith.constant 0 : i32
    %c0_i32_0 = arith.constant 0 : i32
    return %arg0, %c0_i32 : i32, i32
  }
  func.func @transform_1(%arg0: i32) -> (i32, i32) {
    %c0_i32 = arith.constant 0 : i32
    %c0_i32_0 = arith.constant 0 : i32
    %c0_i32_1 = arith.constant 0 : i32
    return %c0_i32, %c0_i32_0 : i32, i32
  }
  func.func @transform_2(%arg0: i32) -> (i32, i32) {
    %c0_i32 = arith.constant 0 : i32
    %c0_i32_0 = arith.constant 0 : i32
    %c0_i32_1 = arith.constant 0 : i32
    return %c0_i32, %c0_i32_0 : i32, i32
  }
  func.func @transform_3(%arg0: i32) -> (i32, i32) {
    %c0_i32 = arith.constant 0 : i32
    %c0_i32_0 = arith.constant 0 : i32
    %c0_i32_1 = arith.constant 0 : i32
    return %c0_i32, %c0_i32_0 : i32, i32
  }
  func.func @transform_4(%arg0: i32) -> (i32, i32) {
    %c0_i32 = arith.constant 0 : i32
    %c0_i32_0 = arith.constant 0 : i32
    %c0_i32_1 = arith.constant 0 : i32
    return %c0_i32, %c0_i32_0 : i32, i32
  }
  func.func @transform_5(%arg0: i32) -> (i32, i32) {
    %c0_i32 = arith.constant 0 : i32
    %c0_i32_0 = arith.constant 0 : i32
    %c0_i32_1 = arith.constant 0 : i32
    return %c0_i32, %c0_i32_0 : i32, i32
  }
  func.func @transform_6(%arg0: i32) -> (i32, i32) {
    %c0_i32 = arith.constant 0 : i32
    %c0_i32_0 = arith.constant 0 : i32
    %c0_i32_1 = arith.constant 0 : i32
    return %c0_i32, %c0_i32_0 : i32, i32
  }
  func.func @transform_7(%arg0: i32) -> (i32, i32) {
    %c0_i32 = arith.constant 0 : i32
    %c0_i32_0 = arith.constant 0 : i32
    %c0_i32_1 = arith.constant 0 : i32
    return %c0_i32, %c0_i32_0 : i32, i32
  }
  func.func @transform_8(%arg0: i32) -> (i32, i32) {
    %c0_i32 = arith.constant 0 : i32
    %c0_i32_0 = arith.constant 0 : i32
    return %arg0, %c0_i32 : i32, i32
  }
}

</mosaic_0001>

<bundles_post_ra>
// kernel: decoder_forward.1
= control target key start
LH: loop header
LB: loop body
LE: loop exit
PB: predicated region body
PF: predicated region fallthrough
CT: control target
= control target key end

     0   :  { %vm550_vm0 = vcmask 130048   ;;  %s2250_s1 = inlined_call_operand.vmem [shape: f32[256,512], index: 1, kind: input, shape index: {}]   ;;  %s2251_s0 = inlined_call_operand.vmem [shape: f32[1,256], index: 0, kind: input, shape index: {}]   ;;  %s2252_s6 = inlined_call_operand.vmem [shape: f32[512,16], index: 6, kind: input, shape index: {}]   ;;  %s2253_s2 = inlined_call_operand.vmem [shape: f32[1,512], index: 2, kind: input, shape index: {}]   ;;  %s2254_s7 = inlined_call_operand.vmem [shape: f32[16,512], index: 7, kind: input, shape index: {}]   ;;  %s2255_s4 = inlined_call_operand.vmem [shape: f32[512,128], index: 4, kind: input, shape index: {}]   ;;  %s2256_s3 = inlined_call_operand.vmem [shape: f32[1,512], index: 3, kind: input, shape index: {}]   ;;  %s2257_s5 = inlined_call_operand.vmem [shape: f32[1,128], index: 5, kind: input, shape index: {}]   ;;  %s2258_s8 = inlined_call_operand.vmem [shape: f32[1,128], index: 8, kind: output, shape index: {}]  }
   0x1   :  { %v31_v0 = vld [vmem:[%s2250_s1 + $0x8] sm:$0xff]  ;;  %v33_v2 = vld [vmem:[%s2250_s1 + $0x18] sm:$0xff]  ;;  %v30_v5 = vld [vmem:[%s2250_s1] sm:$0xff] }
   0x2   :  { %v35_v1 = vld [vmem:[%s2250_s1 + $0x28] sm:$0xff]  ;;  %v37_v4 = vld [vmem:[%s2250_s1 + $0x38] sm:$0xff]  ;;  %v34_v6 = vld [vmem:[%s2250_s1 + $0x20] sm:$0xff] }
   0x3   :  { %v1082_v3 = vpack.c.bf16 %v35_v1, %v31_v0  ;;  %v1146_v7 = vpack.c.bf16 %v37_v4, %v33_v2  ;;  %v1084_v8 = vpack.c.bf16 %v34_v6, %v30_v5  ;;  %v32_v9 = vld [vmem:[%s2250_s1 + $0x10] sm:$0xff]  ;;  %v39_v11 = vld [vmem:[%s2250_s1 + $0x48] sm:$0xff]  ;;  %v41_v14 = vld [vmem:[%s2250_s1 + $0x58] sm:$0xff] }
   0x4   :  { %v36_v10 = vld [vmem:[%s2250_s1 + $0x30] sm:$0xff]  ;;  %v43_v13 = vld [vmem:[%s2250_s1 + $0x68] sm:$0xff]  ;;  %v45_v15 = vld [vmem:[%s2250_s1 + $0x78] sm:$0xff] }
   0x5   :  { %1083 = vmatprep.subr.bf16.mxu0 %v1082_v3  ;;  %v1148_v12 = vpack.c.bf16 %v36_v10, %v32_v9  ;;  %1147 = vmatprep.subr.bf16.mxu1 %v1146_v7  ;;  %v1086_v16 = vpack.c.bf16 %v43_v13, %v39_v11  ;;  %v1150_v17 = vpack.c.bf16 %v45_v15, %v41_v14  ;;  %v38_v18 = vld [vmem:[%s2250_s1 + $0x40] sm:$0xff]  ;;  %v40_v20 = vld [vmem:[%s2250_s1 + $0x50] sm:$0xff]  ;;  %v47_v23 = vld [vmem:[%s2250_s1 + $0x88] sm:$0xff] }
   0x6   :  { %1085 = vmatpush1.bf16.msra.mxu0 %v1084_v8  ;;  %v42_v19 = vld [vmem:[%s2250_s1 + $0x60] sm:$0xff]  ;;  %v44_v22 = vld [vmem:[%s2250_s1 + $0x70] sm:$0xff]  ;;  %v51_v24 = vld [vmem:[%s2250_s1 + $0xa8] sm:$0xff] }
   0x7   :  { %1149 = vmatpush1.bf16.msra.mxu1 %v1148_v12  ;;  %v1088_v21 = vpack.c.bf16 %v42_v19, %v38_v18  ;;  %1087 = vmatprep.subr.bf16.mxu0 %v1086_v16  ;;  %v1152_v25 = vpack.c.bf16 %v44_v22, %v40_v20  ;;  %v1090_v26 = vpack.c.bf16 %v51_v24, %v47_v23  ;;  %v49_v27 = vld [vmem:[%s2250_s1 + $0x98] sm:$0xff]  ;;  %v46_v29 = vld [vmem:[%s2250_s1 + $0x80] sm:$0xff]  ;;  %v48_v32 = vld [vmem:[%s2250_s1 + $0x90] sm:$0xff] }
   0x8   :  { %1151 = vmatprep.subr.bf16.mxu1 %v1150_v17  ;;  %v53_v28 = vld [vmem:[%s2250_s1 + $0xb8] sm:$0xff]  ;;  %v50_v31 = vld [vmem:[%s2250_s1 + $0xa0] sm:$0xff]  ;;  %v52_v33 = vld [vmem:[%s2250_s1 + $0xb0] sm:$0xff] }
   0x9   :  { %v1154_v30 = vpack.c.bf16 %v53_v28, %v49_v27  ;;  %v1092_v34 = vpack.c.bf16 %v50_v31, %v46_v29  ;;  %v55_v35 = vld [vmem:[%s2250_s1 + $0xc8] sm:$0xff]  ;;  %v57_v37 = vld [vmem:[%s2250_s1 + $0xd8] sm:$0xff]  ;;  %v1156_v38 = vpack.c.bf16 %v52_v33, %v48_v32  ;;  %v54_v41 = vld [vmem:[%s2250_s1 + $0xc0] sm:$0xff] }
   0xa   :  { %1089 = vmatpush1.bf16.msra.mxu0 %v1088_v21  ;;  %v59_v36 = vld [vmem:[%s2250_s1 + $0xe8] sm:$0xff]  ;;  %v61_v40 = vld [vmem:[%s2250_s1 + $0xf8] sm:$0xff]  ;;  %v58_v42 = vld [vmem:[%s2250_s1 + $0xe0] sm:$0xff] }
   0xb   :  { %1153 = vmatpush1.bf16.msra.mxu1 %v1152_v25  ;;  %1091 = vmatprep.subr.bf16.mxu0 %v1090_v26  ;;  %v1094_v39 = vpack.c.bf16 %v59_v36, %v55_v35  ;;  %v1158_v43 = vpack.c.bf16 %v61_v40, %v57_v37  ;;  %v56_v44 = vld [vmem:[%s2250_s1 + $0xd0] sm:$0xff]  ;;  %v63_v46 = vld [vmem:[%s2250_s1 + $0x108] sm:$0xff]  ;;  %v65_v48 = vld [vmem:[%s2250_s1 + $0x118] sm:$0xff]  ;;  %v1096_v50 = vpack.c.bf16 %v58_v42, %v54_v41 }
   0xc   :  { %1155 = vmatprep.subr.bf16.mxu1 %v1154_v30  ;;  %v60_v45 = vld [vmem:[%s2250_s1 + $0xf0] sm:$0xff]  ;;  %v67_v47 = vld [vmem:[%s2250_s1 + $0x128] sm:$0xff]  ;;  %v69_v49 = vld [vmem:[%s2250_s1 + $0x138] sm:$0xff] }
   0xd   :  { %v1160_v51 = vpack.c.bf16 %v60_v45, %v56_v44  ;;  %v1098_v52 = vpack.c.bf16 %v67_v47, %v63_v46  ;;  %v62_v53 = vld [vmem:[%s2250_s1 + $0x100] sm:$0xff]  ;;  %v64_v55 = vld [vmem:[%s2250_s1 + $0x110] sm:$0xff]  ;;  %v1162_v56 = vpack.c.bf16 %v69_v49, %v65_v48  ;;  %v71_v58 = vld [vmem:[%s2250_s1 + $0x148] sm:$0xff]  ;;  %v160_v46 = vlaneseq }
   0xe   :  { %1093 = vmatpush1.bf16.msra.mxu0 %v1092_v34  ;;  %v66_v54 = vld [vmem:[%s2250_s1 + $0x120] sm:$0xff]  ;;  %v68_v57 = vld [vmem:[%s2250_s1 + $0x130] sm:$0xff]  ;;  %v75_v59 = vld [vmem:[%s2250_s1 + $0x168] sm:$0xff] }
   0xf   :  { %1157 = vmatpush1.bf16.msra.mxu1 %v1156_v38  ;;  %1095 = vmatprep.subr.bf16.mxu0 %v1094_v39  ;;  %v73_v60 = vld [vmem:[%s2250_s1 + $0x158] sm:$0xff]  ;;  %v1100_v62 = vpack.c.bf16 %v66_v54, %v62_v53  ;;  %v1164_v63 = vpack.c.bf16 %v68_v57, %v64_v55  ;;  %v1102_v0 = vpack.c.bf16 %v75_v59, %v71_v58  ;;  %v70_v1 = vld [vmem:[%s2250_s1 + $0x140] sm:$0xff]  ;;  %v72_v3 = vld [vmem:[%s2250_s1 + $0x150] sm:$0xff]  ;;  %v1647_v59 = vshrl.u32 %v160_v46, 7 }
  0x10   :  { %1159 = vmatprep.subr.bf16.mxu1 %v1158_v43  ;;  %v77_v61 = vld [vmem:[%s2250_s1 + $0x178] sm:$0xff]  ;;  %v74_v2 = vld [vmem:[%s2250_s1 + $0x160] sm:$0xff]  ;;  %v76_v5 = vld [vmem:[%s2250_s1 + $0x170] sm:$0xff] }
  0x11   :  { %v1166_v4 = vpack.c.bf16 %v77_v61, %v73_v60  ;;  %v79_v6 = vld [vmem:[%s2250_s1 + $0x188] sm:$0xff]  ;;  %v81_v8 = vld [vmem:[%s2250_s1 + $0x198] sm:$0xff]  ;;  %v1104_v10 = vpack.c.bf16 %v74_v2, %v70_v1  ;;  %v1168_v11 = vpack.c.bf16 %v76_v5, %v72_v3  ;;  %v78_v13 = vld [vmem:[%s2250_s1 + $0x180] sm:$0xff] }
  0x12   :  { %1097 = vmatpush1.bf16.msra.mxu0 %v1096_v50  ;;  %v83_v7 = vld [vmem:[%s2250_s1 + $0x1a8] sm:$0xff]  ;;  %v85_v9 = vld [vmem:[%s2250_s1 + $0x1b8] sm:$0xff]  ;;  %v82_v14 = vld [vmem:[%s2250_s1 + $0x1a0] sm:$0xff] }
  0x13   :  { %1161 = vmatpush1.bf16.msra.mxu1 %v1160_v51  ;;  %1099 = vmatprep.subr.bf16.mxu0 %v1098_v52  ;;  %v1106_v12 = vpack.c.bf16 %v83_v7, %v79_v6  ;;  %v80_v15 = vld [vmem:[%s2250_s1 + $0x190] sm:$0xff]  ;;  %v1170_v16 = vpack.c.bf16 %v85_v9, %v81_v8  ;;  %v87_v18 = vld [vmem:[%s2250_s1 + $0x1c8] sm:$0xff]  ;;  %v89_v20 = vld [vmem:[%s2250_s1 + $0x1d8] sm:$0xff]  ;;  %v1108_v22 = vpack.c.bf16 %v82_v14, %v78_v13  ;;  %v1674_v8 = vsub.s32 1, %v1647_v59 }
  0x14   :  { %1163 = vmatprep.subr.bf16.mxu1 %v1162_v56  ;;  %v84_v17 = vld [vmem:[%s2250_s1 + $0x1b0] sm:$0xff]  ;;  %v91_v19 = vld [vmem:[%s2250_s1 + $0x1e8] sm:$0xff]  ;;  %v93_v21 = vld [vmem:[%s2250_s1 + $0x1f8] sm:$0xff] }
  0x15   :  { %v1172_v23 = vpack.c.bf16 %v84_v17, %v80_v15  ;;  %v1110_v24 = vpack.c.bf16 %v91_v19, %v87_v18  ;;  %v86_v25 = vld [vmem:[%s2250_s1 + $0x1c0] sm:$0xff]  ;;  %v88_v27 = vld [vmem:[%s2250_s1 + $0x1d0] sm:$0xff]  ;;  %v1174_v28 = vpack.c.bf16 %v93_v21, %v89_v20  ;;  %v95_v30 = vld [vmem:[%s2250_s1 + $0x208] sm:$0xff] }
  0x16   :  { %1101 = vmatpush1.bf16.msra.mxu0 %v1100_v62  ;;  %v90_v26 = vld [vmem:[%s2250_s1 + $0x1e0] sm:$0xff]  ;;  %v92_v29 = vld [vmem:[%s2250_s1 + $0x1f0] sm:$0xff]  ;;  %v99_v31 = vld [vmem:[%s2250_s1 + $0x228] sm:$0xff] }
  0x17   :  { %1165 = vmatpush1.bf16.msra.mxu1 %v1164_v63  ;;  %1103 = vmatprep.subr.bf16.mxu0 %v1102_v0  ;;  %v97_v32 = vld [vmem:[%s2250_s1 + $0x218] sm:$0xff]  ;;  %v1112_v34 = vpack.c.bf16 %v90_v26, %v86_v25  ;;  %v1176_v35 = vpack.c.bf16 %v92_v29, %v88_v27  ;;  %v1114_v36 = vpack.c.bf16 %v99_v31, %v95_v30  ;;  %v94_v37 = vld [vmem:[%s2250_s1 + $0x200] sm:$0xff]  ;;  %v96_v39 = vld [vmem:[%s2250_s1 + $0x210] sm:$0xff] }
  0x18   :  { %1167 = vmatprep.subr.bf16.mxu1 %v1166_v4  ;;  %v101_v33 = vld [vmem:[%s2250_s1 + $0x238] sm:$0xff]  ;;  %v98_v38 = vld [vmem:[%s2250_s1 + $0x220] sm:$0xff]  ;;  %v100_v41 = vld [vmem:[%s2250_s1 + $0x230] sm:$0xff] }
  0x19   :  { %v1178_v40 = vpack.c.bf16 %v101_v33, %v97_v32  ;;  %v103_v42 = vld [vmem:[%s2250_s1 + $0x248] sm:$0xff]  ;;  %v105_v44 = vld [vmem:[%s2250_s1 + $0x258] sm:$0xff]  ;;  %v1116_v47 = vpack.c.bf16 %v98_v38, %v94_v37  ;;  %v1180_v48 = vpack.c.bf16 %v100_v41, %v96_v39  ;;  %v102_v50 = vld [vmem:[%s2250_s1 + $0x240] sm:$0xff] }
  0x1a   :  { %1105 = vmatpush1.bf16.msra.mxu0 %v1104_v10  ;;  %v107_v43 = vld [vmem:[%s2250_s1 + $0x268] sm:$0xff]  ;;  %v109_v45 = vld [vmem:[%s2250_s1 + $0x278] sm:$0xff]  ;;  %v106_v51 = vld [vmem:[%s2250_s1 + $0x260] sm:$0xff] }
  0x1b   :  { %1169 = vmatpush1.bf16.msra.mxu1 %v1168_v11  ;;  %1107 = vmatprep.subr.bf16.mxu0 %v1106_v12  ;;  %v1118_v49 = vpack.c.bf16 %v107_v43, %v103_v42  ;;  %v104_v52 = vld [vmem:[%s2250_s1 + $0x250] sm:$0xff]  ;;  %v1182_v53 = vpack.c.bf16 %v109_v45, %v105_v44  ;;  %v111_v55 = vld [vmem:[%s2250_s1 + $0x288] sm:$0xff]  ;;  %v113_v57 = vld [vmem:[%s2250_s1 + $0x298] sm:$0xff]  ;;  %v1120_v60 = vpack.c.bf16 %v106_v51, %v102_v50 }
  0x1c   :  { %1171 = vmatprep.subr.bf16.mxu1 %v1170_v16  ;;  %v108_v54 = vld [vmem:[%s2250_s1 + $0x270] sm:$0xff]  ;;  %v115_v56 = vld [vmem:[%s2250_s1 + $0x2a8] sm:$0xff]  ;;  %v117_v58 = vld [vmem:[%s2250_s1 + $0x2b8] sm:$0xff] }
  0x1d   :  { %v1184_v61 = vpack.c.bf16 %v108_v54, %v104_v52  ;;  %v1122_v62 = vpack.c.bf16 %v115_v56, %v111_v55  ;;  %v110_v63 = vld [vmem:[%s2250_s1 + $0x280] sm:$0xff]  ;;  %v112_v1 = vld [vmem:[%s2250_s1 + $0x290] sm:$0xff]  ;;  %v1186_v2 = vpack.c.bf16 %v117_v58, %v113_v57  ;;  %v119_v4 = vld [vmem:[%s2250_s1 + $0x2c8] sm:$0xff] }
  0x1e   :  { %1109 = vmatpush1.bf16.msra.mxu0 %v1108_v22  ;;  %v114_v0 = vld [vmem:[%s2250_s1 + $0x2a0] sm:$0xff]  ;;  %v116_v3 = vld [vmem:[%s2250_s1 + $0x2b0] sm:$0xff]  ;;  %v123_v5 = vld [vmem:[%s2250_s1 + $0x2e8] sm:$0xff] }
  0x1f   :  { %1173 = vmatpush1.bf16.msra.mxu1 %v1172_v23  ;;  %1111 = vmatprep.subr.bf16.mxu0 %v1110_v24  ;;  %v121_v6 = vld [vmem:[%s2250_s1 + $0x2d8] sm:$0xff]  ;;  %v1124_v9 = vpack.c.bf16 %v114_v0, %v110_v63  ;;  %v118_v10 = vld [vmem:[%s2250_s1 + $0x2c0] sm:$0xff]  ;;  %v1188_v11 = vpack.c.bf16 %v116_v3, %v112_v1  ;;  %v1126_v12 = vpack.c.bf16 %v123_v5, %v119_v4  ;;  %v120_v14 = vld [vmem:[%s2250_s1 + $0x2d0] sm:$0xff] }
  0x20   :  { %1175 = vmatprep.subr.bf16.mxu1 %v1174_v28  ;;  %v125_v7 = vld [vmem:[%s2250_s1 + $0x2f8] sm:$0xff]  ;;  %v122_v13 = vld [vmem:[%s2250_s1 + $0x2e0] sm:$0xff]  ;;  %v124_v15 = vld [vmem:[%s2250_s1 + $0x2f0] sm:$0xff] }
  0x21   :  { %v1190_v16 = vpack.c.bf16 %v125_v7, %v121_v6  ;;  %v127_v17 = vld [vmem:[%s2250_s1 + $0x308] sm:$0xff]  ;;  %v1697_v19 = vld [vmem:[%s2251_s0] sm:$0x3]  ;;  %v129_v20 = vld [vmem:[%s2250_s1 + $0x318] sm:$0xff]  ;;  %v1128_v23 = vpack.c.bf16 %v122_v13, %v118_v10  ;;  %v1192_v24 = vpack.c.bf16 %v124_v15, %v120_v14  ;;  %v1798_v6 = vsub.s32 0, %v1647_v59 }
  0x22   :  { %1113 = vmatpush1.bf16.msra.mxu0 %v1112_v34  ;;  %v131_v18 = vld [vmem:[%s2250_s1 + $0x328] sm:$0xff]  ;;  %v133_v21 = vld [vmem:[%s2250_s1 + $0x338] sm:$0xff]  ;;  %v167_v22 = vrot.slane %v1697_v19, %v1674_v8  ;;  %v126_v26 = vld [vmem:[%s2250_s1 + $0x300] sm:$0xff] }
  0x23   :  { %1177 = vmatpush1.bf16.msra.mxu1 %v1176_v35  ;;  %1115 = vmatprep.subr.bf16.mxu0 %v1114_v36  ;;  %v1130_v25 = vpack.c.bf16 %v131_v18, %v127_v17  ;;  %v130_v27 = vld [vmem:[%s2250_s1 + $0x320] sm:$0xff]  ;;  %v128_v28 = vld [vmem:[%s2250_s1 + $0x310] sm:$0xff]  ;;  %v1194_v29 = vpack.c.bf16 %v133_v21, %v129_v20  ;;  %v135_v31 = vld [vmem:[%s2250_s1 + $0x348] sm:$0xff]  ;;  %v163_v21 = vrot.slane %v1697_v19, %v1798_v6 }
  0x24   :  { %1179 = vmatprep.subr.bf16.mxu1 %v1178_v40  ;;  %v132_v30 = vld [vmem:[%s2250_s1 + $0x330] sm:$0xff]  ;;  %v139_v32 = vld [vmem:[%s2250_s1 + $0x368] sm:$0xff]  ;;  %255 = vmatprep.mubr.f32.mxu0 %v167_v22  ;;  %v137_v33 = vld [vmem:[%s2250_s1 + $0x358] sm:$0xff]  ;;  %v1132_v35 = vpack.c.bf16 %v130_v27, %v126_v26 }
  0x25   :  { %v141_v34 = vld [vmem:[%s2250_s1 + $0x378] sm:$0xff]  ;;  %326 = vmatprep.mubr.f32.mxu1 %v167_v22  ;;  %v1196_v36 = vpack.c.bf16 %v132_v30, %v128_v28  ;;  %v1134_v37 = vpack.c.bf16 %v139_v32, %v135_v31  ;;  %v134_v38 = vld [vmem:[%s2250_s1 + $0x340] sm:$0xff]  ;;  %v136_v40 = vld [vmem:[%s2250_s1 + $0x350] sm:$0xff] }
  0x26   :  { %1117 = vmatpush1.bf16.msra.mxu0 %v1116_v47  ;;  %v138_v39 = vld [vmem:[%s2250_s1 + $0x360] sm:$0xff]  ;;  %v1198_v41 = vpack.c.bf16 %v141_v34, %v137_v33  ;;  %v140_v42 = vld [vmem:[%s2250_s1 + $0x370] sm:$0xff]  ;;  %v143_v43 = vld [vmem:[%s2250_s1 + $0x388] sm:$0xff] }
  0x27   :  { %1181 = vmatpush1.bf16.msra.mxu1 %v1180_v48  ;;  %1119 = vmatprep.subr.bf16.mxu0 %v1118_v49  ;;  %v147_v44 = vld [vmem:[%s2250_s1 + $0x3a8] sm:$0xff]  ;;  %v145_v45 = vld [vmem:[%s2250_s1 + $0x398] sm:$0xff]  ;;  %v1136_v47 = vpack.c.bf16 %v138_v39, %v134_v38  ;;  %v1200_v48 = vpack.c.bf16 %v140_v42, %v136_v40  ;;  %v142_v50 = vld [vmem:[%s2250_s1 + $0x380] sm:$0xff] }
  0x28   :  { %1183 = vmatprep.subr.bf16.mxu1 %v1182_v53  ;;  %v149_v46 = vld [vmem:[%s2250_s1 + $0x3b8] sm:$0xff]  ;;  %v1138_v49 = vpack.c.bf16 %v147_v44, %v143_v43  ;;  %v146_v51 = vld [vmem:[%s2250_s1 + $0x3a0] sm:$0xff]  ;;  %v144_v52 = vld [vmem:[%s2250_s1 + $0x390] sm:$0xff] }
  0x29   :  { %v1202_v53 = vpack.c.bf16 %v149_v46, %v145_v45  ;;  %v148_v54 = vld [vmem:[%s2250_s1 + $0x3b0] sm:$0xff]  ;;  %v151_v55 = vld [vmem:[%s2250_s1 + $0x3c8] sm:$0xff]  ;;  %v153_v57 = vld [vmem:[%s2250_s1 + $0x3d8] sm:$0xff] }
  0x2a   :  { %1121 = vmatpush1.bf16.msra.mxu0 %v1120_v60  ;;  %v155_v56 = vld [vmem:[%s2250_s1 + $0x3e8] sm:$0xff]  ;;  %v157_v58 = vld [vmem:[%s2250_s1 + $0x3f8] sm:$0xff]  ;;  %v1140_v60 = vpack.c.bf16 %v146_v51, %v142_v50  ;;  %v150_v63 = vld [vmem:[%s2250_s1 + $0x3c0] sm:$0xff] }
  0x2b   :  { %1185 = vmatpush1.bf16.msra.mxu1 %v1184_v61  ;;  %1123 = vmatprep.subr.bf16.mxu0 %v1122_v62  ;;  %v1204_v61 = vpack.c.bf16 %v148_v54, %v144_v52  ;;  %v1142_v62 = vpack.c.bf16 %v155_v56, %v151_v55  ;;  %v154_v0 = vld [vmem:[%s2250_s1 + $0x3e0] sm:$0xff]  ;;  %v152_v1 = vld [vmem:[%s2250_s1 + $0x3d0] sm:$0xff]  ;;  %v354_v5 = vld [vmem:[%s2252_s6 + $0x88] sm:$0xff] }
  0x2c   :  { %1187 = vmatprep.subr.bf16.mxu1 %v1186_v2  ;;  %v1206_v2 = vpack.c.bf16 %v157_v58, %v153_v57  ;;  %v156_v3 = vld [vmem:[%s2250_s1 + $0x3f0] sm:$0xff]  ;;  %v353_v4 = vld [vmem:[%s2252_s6 + $0x80] sm:$0xff]  ;;  %v1144_v10 = vpack.c.bf16 %v154_v0, %v150_v63  ;;  %v338_v14 = vld [vmem:[%s2252_s6 + $0x8] sm:$0xff] }
  0x2d   :  { %v385_v7 = vld [vmem:[%s2252_s6 + $0x180] sm:$0xff]  ;;  %v370_v17 = vld [vmem:[%s2252_s6 + $0x108] sm:$0xff]  ;;  %v355_v18 = vld [vmem:[%s2252_s6 + $0x90] sm:$0xff] }
  0x2e   :  { %1125 = vmatpush1.bf16.msra.mxu0 %v1124_v9  ;;  %v386_v9 = vld [vmem:[%s2252_s6 + $0x188] sm:$0xff]  ;;  %v337_v13 = vld [vmem:[%s2252_s6] sm:$0xff]  ;;  %v356_v20 = vld [vmem:[%s2252_s6 + $0x98] sm:$0xff] }
  0x2f   :  { %1189 = vmatpush1.bf16.msra.mxu1 %v1188_v11  ;;  %1127 = vmatprep.subr.bf16.mxu0 %v1126_v12  ;;  %v1208_v11 = vpack.c.bf16 %v156_v3, %v152_v1  ;;  %v1210_v12 = vpack.c.bf16 %v354_v5, %v353_v4  ;;  %v369_v15 = vld [vmem:[%s2252_s6 + $0x100] sm:$0xff]  ;;  %v387_v22 = vld [vmem:[%s2252_s6 + $0x190] sm:$0xff]  ;;  %v1214_v26 = vpack.c.bf16 %v356_v20, %v355_v18  ;;  %v340_v19 = vld [vmem:[%s2252_s6 + $0x18] sm:$0xff] }
  0x30   :  { %1191 = vmatprep.subr.bf16.mxu1 %v1190_v16  ;;  %v1242_v16 = vpack.c.bf16 %v386_v9, %v385_v7  ;;  %v339_v27 = vld [vmem:[%s2252_s6 + $0x10] sm:$0xff]  ;;  %v372_v30 = vld [vmem:[%s2252_s6 + $0x118] sm:$0xff]  ;;  %v357_v31 = vld [vmem:[%s2252_s6 + $0xa0] sm:$0xff] }
  0x31   :  { %v371_v28 = vld [vmem:[%s2252_s6 + $0x110] sm:$0xff]  ;;  %v358_v32 = vld [vmem:[%s2252_s6 + $0xa8] sm:$0xff]  ;;  %v389_v33 = vld [vmem:[%s2252_s6 + $0x1a0] sm:$0xff] }
  0x32   :  { %1129 = vmatpush1.bf16.msra.mxu0 %v1128_v23  ;;  %v388_v23 = vld [vmem:[%s2252_s6 + $0x198] sm:$0xff]  ;;  %v390_v34 = vld [vmem:[%s2252_s6 + $0x1a8] sm:$0xff]  ;;  %v341_v38 = vld [vmem:[%s2252_s6 + $0x20] sm:$0xff] }
  0x33   :  { %1193 = vmatpush1.bf16.msra.mxu1 %v1192_v24  ;;  %1131 = vmatprep.subr.bf16.mxu0 %v1130_v25  ;;  %v1212_v24 = vpack.c.bf16 %v338_v14, %v337_v13  ;;  %v1244_v25 = vpack.c.bf16 %v370_v17, %v369_v15  ;;  %v342_v39 = vld [vmem:[%s2252_s6 + $0x28] sm:$0xff]  ;;  %v373_v40 = vld [vmem:[%s2252_s6 + $0x120] sm:$0xff]  ;;  %v359_v43 = vld [vmem:[%s2252_s6 + $0xb0] sm:$0xff] }
  0x34   :  { %1195 = vmatprep.subr.bf16.mxu1 %v1194_v29  ;;  %v1246_v29 = vpack.c.bf16 %v388_v23, %v387_v22  ;;  %v374_v42 = vld [vmem:[%s2252_s6 + $0x128] sm:$0xff]  ;;  %v360_v44 = vld [vmem:[%s2252_s6 + $0xb8] sm:$0xff]  ;;  %v391_v45 = vld [vmem:[%s2252_s6 + $0x1b0] sm:$0xff] }
  0x35   :  { %v392_v46 = vld [vmem:[%s2252_s6 + $0x1b8] sm:$0xff]  ;;  %v343_v50 = vld [vmem:[%s2252_s6 + $0x30] sm:$0xff]  ;;  %v361_v55 = vld [vmem:[%s2252_s6 + $0xc0] sm:$0xff] }
  0x36   :  { %1133 = vmatpush1.bf16.msra.mxu0 %v1132_v35  ;;  %v1216_v35 = vpack.c.bf16 %v340_v19, %v339_v27  ;;  %v344_v51 = vld [vmem:[%s2252_s6 + $0x38] sm:$0xff]  ;;  %v375_v52 = vld [vmem:[%s2252_s6 + $0x130] sm:$0xff]  ;;  %v362_v56 = vld [vmem:[%s2252_s6 + $0xc8] sm:$0xff] }
  0x37   :  { %1197 = vmatpush1.bf16.msra.mxu1 %v1196_v36  ;;  %1135 = vmatprep.subr.bf16.mxu0 %v1134_v37  ;;  %v1248_v36 = vpack.c.bf16 %v372_v30, %v371_v28  ;;  %v1218_v37 = vpack.c.bf16 %v358_v32, %v357_v31  ;;  %v376_v54 = vld [vmem:[%s2252_s6 + $0x138] sm:$0xff]  ;;  %v393_v57 = vld [vmem:[%s2252_s6 + $0x1c0] sm:$0xff]  ;;  %v394_v58 = vld [vmem:[%s2252_s6 + $0x1c8] sm:$0xff] }
  0x38   :  { %1199 = vmatprep.subr.bf16.mxu1 %v1198_v41  ;;  %v1250_v41 = vpack.c.bf16 %v390_v34, %v389_v33  ;;  %v345_v63 = vld [vmem:[%s2252_s6 + $0x40] sm:$0xff]  ;;  %v346_v0 = vld [vmem:[%s2252_s6 + $0x48] sm:$0xff]  ;;  %v363_v4 = vld [vmem:[%s2252_s6 + $0xd0] sm:$0xff] }
  0x39   :  { %v377_v1 = vld [vmem:[%s2252_s6 + $0x140] sm:$0xff]  ;;  %v378_v3 = vld [vmem:[%s2252_s6 + $0x148] sm:$0xff]  ;;  %v364_v5 = vld [vmem:[%s2252_s6 + $0xd8] sm:$0xff] }
  0x3a   :  { %1137 = vmatpush1.bf16.msra.mxu0 %v1136_v47  ;;  %v1220_v47 = vpack.c.bf16 %v342_v39, %v341_v38  ;;  %v395_v7 = vld [vmem:[%s2252_s6 + $0x1d0] sm:$0xff]  ;;  %v396_v9 = vld [vmem:[%s2252_s6 + $0x1d8] sm:$0xff]  ;;  %v365_v18 = vld [vmem:[%s2252_s6 + $0xe0] sm:$0xff] }
  0x3b   :  { %1201 = vmatpush1.bf16.msra.mxu1 %v1200_v48  ;;  %1139 = vmatprep.subr.bf16.mxu0 %v1138_v49  ;;  %v1252_v48 = vpack.c.bf16 %v374_v42, %v373_v40  ;;  %v1222_v49 = vpack.c.bf16 %v360_v44, %v359_v43  ;;  %v347_v13 = vld [vmem:[%s2252_s6 + $0x50] sm:$0xff]  ;;  %v348_v14 = vld [vmem:[%s2252_s6 + $0x58] sm:$0xff]  ;;  %v366_v20 = vld [vmem:[%s2252_s6 + $0xe8] sm:$0xff] }
  0x3c   :  { %1203 = vmatprep.subr.bf16.mxu1 %v1202_v53  ;;  %v1254_v53 = vpack.c.bf16 %v392_v46, %v391_v45  ;;  %v379_v15 = vld [vmem:[%s2252_s6 + $0x150] sm:$0xff]  ;;  %v380_v17 = vld [vmem:[%s2252_s6 + $0x158] sm:$0xff]  ;;  %v398_v22 = vld [vmem:[%s2252_s6 + $0x1e8] sm:$0xff]  ;;  %v1232_v23 = vpack.c.bf16 %v348_v14, %v347_v13  ;;  %v181_v45 = vsub.s32 2, %v1647_v59  ;;  %v185_v46 = vsub.s32 3, %v1647_v59 }
  0x3d   :  { %v349_v27 = vld [vmem:[%s2252_s6 + $0x60] sm:$0xff]  ;;  %v350_v19 = vld [vmem:[%s2252_s6 + $0x68] sm:$0xff]  ;;  %v367_v32 = vld [vmem:[%s2252_s6 + $0xf0] sm:$0xff] }
  0x3e   :  { %1141 = vmatpush1.bf16.msra.mxu0 %v1140_v60  ;;  %v1224_v60 = vpack.c.bf16 %v344_v51, %v343_v50  ;;  %v381_v28 = vld [vmem:[%s2252_s6 + $0x160] sm:$0xff]  ;;  %v382_v30 = vld [vmem:[%s2252_s6 + $0x168] sm:$0xff]  ;;  %v368_v33 = vld [vmem:[%s2252_s6 + $0xf8] sm:$0xff] }
  0x3f   :  { %1205 = vmatpush1.bf16.msra.mxu1 %v1204_v61  ;;  %1143 = vmatprep.subr.bf16.mxu0 %v1142_v62  ;;  %v1256_v61 = vpack.c.bf16 %v376_v54, %v375_v52  ;;  %v1226_v62 = vpack.c.bf16 %v362_v56, %v361_v55  ;;  %v1268_v31 = vpack.c.bf16 %v382_v30, %v381_v28  ;;  %v399_v34 = vld [vmem:[%s2252_s6 + $0x1f0] sm:$0xff]  ;;  %v352_v38 = vld [vmem:[%s2252_s6 + $0x78] sm:$0xff]  ;;  %v158_v44 = vld [vmem:[%s2253_s2] sm:$0xf] }
  0x40   :  { %1207 = vmatprep.subr.bf16.mxu1 %v1206_v2  ;;  %v1258_v2 = vpack.c.bf16 %v394_v58, %v393_v57  ;;  %v384_v42 = vld [vmem:[%s2252_s6 + $0x178] sm:$0xff]  ;;  %v186_v50 = vrot.slane %v158_v44, %v185_v46  ;;  %v548_v13 = vld [vmem:[%s2254_s7 + $0x30] sm:$0xff]  ;;  %v731_v30 = vld [vmem:[%s2255_s4 + $0x8] sm:$0xff] }
  0x42   :  { %1145 = vmatpush1.bf16.msra.mxu0 %v1144_v10  ;;  %v1228_v10 = vpack.c.bf16 %v346_v0, %v345_v63  ;;  %v543_v0 = vld [vmem:[%s2254_s7 + $0x8] sm:$0xff] }
  0x43   :  { %1209 = vmatpush1.bf16.msra.mxu1 %v1208_v11  ;;  %1211 = vmatprep.subr.bf16.mxu0 %v1210_v12  ;;  %v1260_v11 = vpack.c.bf16 %v378_v3, %v377_v1  ;;  %v1230_v12 = vpack.c.bf16 %v364_v5, %v363_v4  ;;  %v547_v1 = vld [vmem:[%s2254_s7 + $0x28] sm:$0xff]  ;;  %v1349_v3 = vmov 0.0   ;;  %v546_v5 = vld [vmem:[%s2254_s7 + $0x20] sm:$0xff] }
  0x44   :  { %1243 = vmatprep.subr.bf16.mxu1 %v1242_v16  ;;  %v1262_v16 = vpack.c.bf16 %v396_v9, %v395_v7  ;;  %v1274_v4 = vpack.c.bf16 %v547_v1, %v543_v0  ;;  %v545_v7 = vld [vmem:[%s2254_s7 + $0x18] sm:$0xff]  ;;  %v767_v0 = vld [vmem:[%s2255_s4 + $0x128] sm:$0xff]  ;;  %v752_v1 = vld [vmem:[%s2255_s4 + $0xb0] sm:$0xff] }
  0x45   :  { %256 = vmatmul.mubr.f32.vlgmr.msra.gmra.mrb[0].mxu0 %v163_v21  ;;  %v549_v9 = vld [vmem:[%s2254_s7 + $0x38] sm:$0xff] }
  0x46   :  { %327 = vmatmul.mubr.f32.vlgmr.msra.gmra.mrb[0].mxu1 %v163_v21  ;;  %1213 = vmatpush3.bf16.msra.mxu0 %v1212_v24  ;;  %v397_v21 = vld [vmem:[%s2252_s6 + $0x1e0] sm:$0xff]  ;;  %v1264_v24 = vpack.c.bf16 %v380_v17, %v379_v15 }
  0x47   :  { %1245 = vmatpush3.bf16.msra.mxu1 %v1244_v25  ;;  %1215 = vmatprep.subr.bf16.mxu0 %v1214_v26  ;;  %v1234_v25 = vpack.c.bf16 %v366_v20, %v365_v18  ;;  %v1266_v26 = vpack.c.bf16 %v398_v22, %v397_v21  ;;  %v746_v15 = vld [vmem:[%s2255_s4 + $0x80] sm:$0xff]  ;;  %v779_v20 = vld [vmem:[%s2255_s4 + $0x188] sm:$0xff] }
  0x48   :  { %1247 = vmatprep.subr.bf16.mxu1 %v1246_v29  ;;  %v1236_v29 = vpack.c.bf16 %v350_v19, %v349_v27  ;;  %v778_v17 = vld [vmem:[%s2255_s4 + $0x180] sm:$0xff] }
  0x49   :  { %v1314_v21 = vpack.c.bf16 %v779_v20, %v778_v17  ;;  %v786_v17 = vld [vmem:[%s2255_s4 + $0x1c0] sm:$0xff] }
  0x4a   :  { %1217 = vmatpush3.bf16.msra.mxu0 %v1216_v35  ;;  %v1238_v35 = vpack.c.bf16 %v368_v33, %v367_v32  ;;  %v763_v32 = vld [vmem:[%s2255_s4 + $0x108] sm:$0xff]  ;;  %v748_v33 = vld [vmem:[%s2255_s4 + $0x90] sm:$0xff] }
  0x4b   :  { %1249 = vmatpush3.bf16.msra.mxu1 %v1248_v36  ;;  %1219 = vmatprep.subr.bf16.mxu0 %v1218_v37  ;;  %v400_v36 = vld [vmem:[%s2252_s6 + $0x1f8] sm:$0xff]  ;;  %v351_v37 = vld [vmem:[%s2252_s6 + $0x70] sm:$0xff] }
  0x4c   :  { %1251 = vmatprep.subr.bf16.mxu1 %v1250_v41  ;;  %v1270_v39 = vpack.c.bf16 %v400_v36, %v399_v34  ;;  %v1240_v40 = vpack.c.bf16 %v352_v38, %v351_v37  ;;  %v383_v41 = vld [vmem:[%s2252_s6 + $0x170] sm:$0xff]  ;;  %v749_v34 = vld [vmem:[%s2255_s4 + $0x98] sm:$0xff] }
  0x4d   :  { %v1272_v43 = vpack.c.bf16 %v384_v42, %v383_v41  ;;  %v781_v36 = vld [vmem:[%s2255_s4 + $0x198] sm:$0xff]  ;;  %v1286_v41 = vpack.c.bf16 %v749_v34, %v748_v33  ;;  %v740_v33 = vld [vmem:[%s2255_s4 + $0x50] sm:$0xff] }
  0x4e   :  { %1221 = vmatpush3.bf16.msra.mxu0 %v1220_v47  ;;  %v174_v47 = vrot.slane %v158_v44, %v1798_v6 }
  0x4f   :  { %1253 = vmatpush3.bf16.msra.mxu1 %v1252_v48  ;;  %1223 = vmatprep.subr.bf16.mxu0 %v1222_v49  ;;  %v182_v48 = vrot.slane %v158_v44, %v181_v45  ;;  %v178_v49 = vrot.slane %v158_v44, %v1674_v8  ;;  %v765_v44 = vld [vmem:[%s2255_s4 + $0x118] sm:$0xff] }
  0x50   :  { %1255 = vmatprep.subr.bf16.mxu1 %v1254_v53 }
  0x52   :  { %1225 = vmatpush3.bf16.msra.mxu0 %v1224_v60 }
  0x53   :  { %1257 = vmatpush3.bf16.msra.mxu1 %v1256_v61  ;;  %1227 = vmatprep.subr.bf16.mxu0 %v1226_v62 }
  0x54   :  { %1259 = vmatprep.subr.bf16.mxu1 %v1258_v2  ;;  %v542_v2 = vld [vmem:[%s2254_s7] sm:$0xff] }
  0x56   :  { %1229 = vmatpush3.bf16.msra.mxu0 %v1228_v10  ;;  %v1276_v10 = vpack.c.bf16 %v546_v5, %v542_v2  ;;  %v753_v2 = vld [vmem:[%s2255_s4 + $0xb8] sm:$0xff] }
  0x57   :  { %1261 = vmatpush3.bf16.msra.mxu1 %v1260_v11  ;;  %1231 = vmatprep.subr.bf16.mxu0 %v1230_v12  ;;  %v1278_v11 = vpack.c.bf16 %v549_v9, %v545_v7  ;;  %v544_v12 = vld [vmem:[%s2254_s7 + $0x10] sm:$0xff] }
  0x58   :  { %1263 = vmatprep.subr.bf16.mxu1 %v1262_v16  ;;  %v1280_v14 = vpack.c.bf16 %v548_v13, %v544_v12  ;;  %v747_v16 = vld [vmem:[%s2255_s4 + $0x88] sm:$0xff]  ;;  %v736_v9 = vld [vmem:[%s2255_s4 + $0x30] sm:$0xff] }
  0x59   :  { %v1282_v18 = vpack.c.bf16 %v747_v16, %v746_v15  ;;  %v768_v13 = vld [vmem:[%s2255_s4 + $0x130] sm:$0xff]  ;;  %v754_v15 = vld [vmem:[%s2255_s4 + $0xc0] sm:$0xff]  ;;  %v755_v16 = vld [vmem:[%s2255_s4 + $0xc8] sm:$0xff] }
  0x5a   :  { %1233 = vmatpush3.bf16.msra.mxu0 %v1232_v23 }
  0x5b   :  { %1265 = vmatpush3.bf16.msra.mxu1 %v1264_v24  ;;  %1235 = vmatprep.subr.bf16.mxu0 %v1234_v25 }
  0x5c   :  { %1267 = vmatprep.subr.bf16.mxu1 %v1266_v26 }
  0x5e   :  { %1237 = vmatpush3.bf16.msra.mxu0 %v1236_v29  ;;  %v730_v29 = vld [vmem:[%s2255_s4] sm:$0xff] }
  0x5f   :  { %1269 = vmatpush3.bf16.msra.mxu1 %v1268_v31  ;;  %1239 = vmatprep.subr.bf16.mxu0 %v1238_v35  ;;  %v762_v31 = vld [vmem:[%s2255_s4 + $0x100] sm:$0xff]  ;;  %v780_v35 = vld [vmem:[%s2255_s4 + $0x190] sm:$0xff]  ;;  %v1284_v37 = vpack.c.bf16 %v731_v30, %v730_v29  ;;  %v789_v30 = vld [vmem:[%s2255_s4 + $0x1d8] sm:$0xff] }
  0x60   :  { %1271 = vmatprep.subr.bf16.mxu1 %v1270_v39  ;;  %v1316_v38 = vpack.c.bf16 %v763_v32, %v762_v31  ;;  %v732_v39 = vld [vmem:[%s2255_s4 + $0x10] sm:$0xff]  ;;  %v1318_v42 = vpack.c.bf16 %v781_v36, %v780_v35  ;;  %v741_v36 = vld [vmem:[%s2255_s4 + $0x58] sm:$0xff] }
  0x61   :  { %v788_v29 = vld [vmem:[%s2255_s4 + $0x1d0] sm:$0xff] }
  0x62   :  { %1241 = vmatpush3.bf16.msra.mxu0 %v1240_v40  ;;  %v733_v40 = vld [vmem:[%s2255_s4 + $0x18] sm:$0xff]  ;;  %v1334_v35 = vpack.c.bf16 %v789_v30, %v788_v29 }
  0x63   :  { %1273 = vmatpush3.bf16.msra.mxu1 %v1272_v43  ;;  %1275 = vmatprep.subr.bf16.mxu0 %v1274_v4  ;;  %v764_v43 = vld [vmem:[%s2255_s4 + $0x110] sm:$0xff]  ;;  %v785_v4 = vld [vmem:[%s2255_s4 + $0x1b8] sm:$0xff] }
  0x64   :  { %1279 = vmatprep.subr.bf16.mxu1 %v1278_v11  ;;  %v1294_v11 = vpack.c.bf16 %v753_v2, %v752_v1  ;;  %v744_v1 = vld [vmem:[%s2255_s4 + $0x70] sm:$0xff]  ;;  %v745_v2 = vld [vmem:[%s2255_s4 + $0x78] sm:$0xff] }
 0x118   :  { %v257_v51 = vpop.f32.mrb[0].mxu0 }
 0x119   :  { %v1999_v52 = vadd.f32 %v257_v51, %v174_v47  ;;  %v328_v53 = vpop.f32.mrb[0].mxu1  ;;  %v259_v54 = vpop.f32.mrb[1].mxu0  ;;  %v750_v47 = vld [vmem:[%s2255_s4 + $0xa0] sm:$0xff]  ;;  %v783_v51 = vld [vmem:[%s2255_s4 + $0x1a8] sm:$0xff] }
 0x11a   :  { %v2001_v55 = vadd.f32 %v328_v53, %v182_v48  ;;  %v2003_v56 = vadd.f32 %v259_v54, %v178_v49  ;;  %v330_v57 = vpop.f32.mrb[1].mxu1  ;;  %v751_v49 = vld [vmem:[%s2255_s4 + $0xa8] sm:$0xff]  ;;  %v1288_v53 = vpack.c.bf16 %v733_v40, %v732_v39  ;;  %v1320_v54 = vpack.c.bf16 %v765_v44, %v764_v43  ;;  %v790_v43 = vld [vmem:[%s2255_s4 + $0x1e0] sm:$0xff] }
 0x11b   :  { %v2005_v58 = vadd.f32 %v330_v57, %v186_v50  ;;  %v333_v62 = vmul.f32 %v1999_v52, %v1999_v52  ;;  %v782_v50 = vld [vmem:[%s2255_s4 + $0x1a0] sm:$0xff]  ;;  %v1304_v39 = vpack.c.bf16 %v741_v36, %v740_v33 }
 0x11c   :  { %v335_v60 = vmul.f32 %v2001_v55, %v2001_v55  ;;  %v334_v61 = vmul.f32 %v2003_v56, %v2003_v56  ;;  %v734_v57 = vld [vmem:[%s2255_s4 + $0x20] sm:$0xff] }
 0x11d   :  { %v336_v63 = vmul.f32 %v2005_v58, %v2005_v58 }
 0x11e   :  { %465 = vmatprep.mubr.f32.mxu0 %v334_v61  ;;  %v1290_v61 = vpack.c.bf16 %v751_v49, %v750_v47  ;;  %v791_v47 = vld [vmem:[%s2255_s4 + $0x1e8] sm:$0xff] }
 0x11f   :  { %535 = vmatprep.mubr.f32.mxu1 %v336_v63  ;;  %466 = vmatmul.mubr.f32.vlgmr.msra.gmra.mrb[2].mxu0 %v333_v62  ;;  %v1322_v62 = vpack.c.bf16 %v783_v51, %v782_v50  ;;  %v766_v63 = vld [vmem:[%s2255_s4 + $0x120] sm:$0xff]  ;;  %v743_v49 = vld [vmem:[%s2255_s4 + $0x68] sm:$0xff]  ;;  %v1338_v50 = vpack.c.bf16 %v791_v47, %v790_v43 }
 0x120   :  { %536 = vmatmul.mubr.f32.vlgmr.msra.gmra.mrb[2].mxu1 %v335_v60  ;;  %618 = vmatprep.mubr.f32.mxu0 %v1349_v3  ;;  %v735_v60 = vld [vmem:[%s2255_s4 + $0x28] sm:$0xff]  ;;  %v1324_v7 = vpack.c.bf16 %v767_v0, %v766_v63  ;;  %v793_v0 = vld [vmem:[%s2255_s4 + $0x1f8] sm:$0xff] }
 0x121   :  { %689 = vmatprep.mubr.f32.mxu1 %v1349_v3  ;;  %1277 = vmatpush1.bf16.msra.mxu0 %v1276_v10  ;;  %v784_v3 = vld [vmem:[%s2255_s4 + $0x1b0] sm:$0xff]  ;;  %v1292_v5 = vpack.c.bf16 %v735_v60, %v734_v57  ;;  %v737_v10 = vld [vmem:[%s2255_s4 + $0x38] sm:$0xff] }
 0x122   :  { %1281 = vmatpush1.bf16.msra.mxu1 %v1280_v14  ;;  %1283 = vmatprep.subr.bf16.mxu0 %v1282_v18  ;;  %v1326_v12 = vpack.c.bf16 %v785_v4, %v784_v3  ;;  %v769_v14 = vld [vmem:[%s2255_s4 + $0x138] sm:$0xff]  ;;  %v787_v18 = vld [vmem:[%s2255_s4 + $0x1c8] sm:$0xff]  ;;  %v1296_v20 = vpack.c.bf16 %v737_v10, %v736_v9  ;;  %v760_v60 = vld [vmem:[%s2255_s4 + $0xf0] sm:$0xff]  ;;  %v1312_v4 = vpack.c.bf16 %v745_v2, %v744_v1 }
 0x123   :  { %1315 = vmatprep.subr.bf16.mxu1 %v1314_v21  ;;  %v1328_v21 = vpack.c.bf16 %v769_v14, %v768_v13  ;;  %v700_v10 = vld [vmem:[%s2256_s3] sm:$0xf] }
 0x1f2   :  { %v974_v22 = vpop.f32.mrb[2].mxu0 }
 0x1f3   :  { %v1009_v23 = vpop.f32.mrb[2].mxu1  ;;  %v975_v24 = vpop.f32.mrb[3].mxu0 }
 0x1f4   :  { %v976_v25 = vadd.f32 %v975_v24, %v974_v22  ;;  %v1010_v26 = vpop.f32.mrb[3].mxu1  ;;  %v738_v22 = vld [vmem:[%s2255_s4 + $0x40] sm:$0xff]  ;;  %v1298_v24 = vpack.c.bf16 %v755_v16, %v754_v15  ;;  %v709_v15 = vrot.slane %v700_v10, %v1674_v8  ;;  %v717_v16 = vrot.slane %v700_v10, %v185_v46 }
 0x1f5   :  { %v1011_v27 = vadd.f32 %v1010_v26, %v1009_v23  ;;  %v739_v23 = vld [vmem:[%s2255_s4 + $0x48] sm:$0xff]  ;;  %v770_v26 = vld [vmem:[%s2255_s4 + $0x140] sm:$0xff] }
 0x1f6   :  { %v468_v19 = vadd.f32 1e-05, %v976_v25  ;;  %v1330_v25 = vpack.c.bf16 %v787_v18, %v786_v17  ;;  %v1300_v31 = vpack.c.bf16 %v739_v23, %v738_v22 }
 0x1f8   :  { %v538_v28 = vadd.f32 %v1011_v27, %v468_v19  ;;  %v771_v27 = vld [vmem:[%s2255_s4 + $0x148] sm:$0xff]  ;;  %v756_v19 = vld [vmem:[%s2255_s4 + $0xd0] sm:$0xff] }
 0x1f9   :  { %v1332_v32 = vpack.c.bf16 %v771_v27, %v770_v26 }
 0x1fa   :  { %1347 = vrsqrt.f32 %v538_v28  ;;  %v757_v28 = vld [vmem:[%s2255_s4 + $0xd8] sm:$0xff] }
 0x1fb   :  { %v1302_v34 = vpack.c.bf16 %v757_v28, %v756_v19 }
 0x204   :  { %v1348_v48 = vpop.eup %1347 }
 0x205   :  { %940 = vmatmul.mubr.msk.f32.vlgmr.msra.gmra.mrb[4].mxu0 %vm550_vm0, %v1348_v48  ;;  %941 = vmatmul.mubr.msk.f32.vlgmr.msra.gmra.mrb[4].mxu1 %vm550_vm0, %v1348_v48  ;;  %v742_v48 = vld [vmem:[%s2255_s4 + $0x60] sm:$0xff] }
 0x206   :  { %1285 = vmatpush3.bf16.msra.mxu0 %v1284_v37  ;;  %1317 = vmatpush3.bf16.msra.mxu1 %v1316_v38  ;;  %v772_v37 = vld [vmem:[%s2255_s4 + $0x150] sm:$0xff]  ;;  %v773_v38 = vld [vmem:[%s2255_s4 + $0x158] sm:$0xff]  ;;  %v1308_v51 = vpack.c.bf16 %v743_v49, %v742_v48 }
 0x207   :  { %1287 = vmatprep.subr.bf16.mxu0 %v1286_v41  ;;  %1319 = vmatprep.subr.bf16.mxu1 %v1318_v42  ;;  %v1336_v40 = vpack.c.bf16 %v773_v38, %v772_v37  ;;  %v758_v41 = vld [vmem:[%s2255_s4 + $0xe0] sm:$0xff]  ;;  %v759_v42 = vld [vmem:[%s2255_s4 + $0xe8] sm:$0xff] }
 0x208   :  { %v1306_v44 = vpack.c.bf16 %v759_v42, %v758_v41 }
 0x20a   :  { %1289 = vmatpush3.bf16.msra.mxu0 %v1288_v53  ;;  %1321 = vmatpush3.bf16.msra.mxu1 %v1320_v54  ;;  %v774_v53 = vld [vmem:[%s2255_s4 + $0x160] sm:$0xff]  ;;  %v775_v54 = vld [vmem:[%s2255_s4 + $0x168] sm:$0xff] }
 0x20b   :  { %1291 = vmatprep.subr.bf16.mxu0 %v1290_v61  ;;  %1323 = vmatprep.subr.bf16.mxu1 %v1322_v62  ;;  %v1340_v57 = vpack.c.bf16 %v775_v54, %v774_v53  ;;  %v761_v61 = vld [vmem:[%s2255_s4 + $0xf8] sm:$0xff]  ;;  %v792_v62 = vld [vmem:[%s2255_s4 + $0x1f0] sm:$0xff] }
 0x20c   :  { %v1310_v63 = vpack.c.bf16 %v761_v61, %v760_v60  ;;  %v1342_v3 = vpack.c.bf16 %v793_v0, %v792_v62 }
 0x20e   :  { %1293 = vmatpush3.bf16.msra.mxu0 %v1292_v5  ;;  %1325 = vmatpush3.bf16.msra.mxu1 %v1324_v7  ;;  %v776_v5 = vld [vmem:[%s2255_s4 + $0x170] sm:$0xff]  ;;  %v777_v7 = vld [vmem:[%s2255_s4 + $0x178] sm:$0xff] }
 0x20f   :  { %1295 = vmatprep.subr.bf16.mxu0 %v1294_v11  ;;  %1327 = vmatprep.subr.bf16.mxu1 %v1326_v12  ;;  %v1344_v9 = vpack.c.bf16 %v777_v7, %v776_v5  ;;  %v705_v11 = vrot.slane %v700_v10, %v1798_v6  ;;  %v713_v12 = vrot.slane %v700_v10, %v181_v45 }
 0x212   :  { %1297 = vmatpush3.bf16.msra.mxu0 %v1296_v20  ;;  %1329 = vmatpush3.bf16.msra.mxu1 %v1328_v21 }
 0x213   :  { %1299 = vmatprep.subr.bf16.mxu0 %v1298_v24  ;;  %1331 = vmatprep.subr.bf16.mxu1 %v1330_v25 }
 0x216   :  { %1301 = vmatpush3.bf16.msra.mxu0 %v1300_v31  ;;  %1333 = vmatpush3.bf16.msra.mxu1 %v1332_v32 }
 0x217   :  { %1303 = vmatprep.subr.bf16.mxu0 %v1302_v34  ;;  %1335 = vmatprep.subr.bf16.mxu1 %v1334_v35 }
 0x21a   :  { %1305 = vmatpush3.bf16.msra.mxu0 %v1304_v39  ;;  %1337 = vmatpush3.bf16.msra.mxu1 %v1336_v40 }
 0x21b   :  { %1307 = vmatprep.subr.bf16.mxu0 %v1306_v44  ;;  %1339 = vmatprep.subr.bf16.mxu1 %v1338_v50 }
 0x21e   :  { %1309 = vmatpush3.bf16.msra.mxu0 %v1308_v51  ;;  %1341 = vmatpush3.bf16.msra.mxu1 %v1340_v57 }
 0x21f   :  { %1311 = vmatprep.subr.bf16.mxu0 %v1310_v63  ;;  %1343 = vmatprep.subr.bf16.mxu1 %v1342_v3 }
 0x222   :  { %1313 = vmatpush3.bf16.msra.mxu0 %v1312_v4  ;;  %1345 = vmatpush3.bf16.msra.mxu1 %v1344_v9 }
 0x2d8   :  { %v620_v13 = vpop.f32.mrb[4].mxu0  ;;  %v691_v14 = vpop.f32.mrb[4].mxu1 }
 0x2d9   :  { %v696_v17 = vmul.f32 %v620_v13, %v1999_v52  ;;  %v698_v18 = vmul.f32 %v691_v14, %v2001_v55  ;;  %v622_v20 = vpop.f32.mrb[5].mxu0  ;;  %v693_v21 = vpop.f32.mrb[5].mxu1  ;;  %v794_v52 = vld [vmem:[%s2257_s5] sm:$0x1] }
 0x2da   :  { %v697_v22 = vmul.f32 %v622_v20, %v2003_v56  ;;  %v699_v6 = vmul.f32 %v693_v21, %v2005_v58 }
 0x2db   :  { %v722_v23 = vadd.f32 %v705_v11, %v696_v17  ;;  %v724_v24 = vadd.f32 %v713_v12, %v698_v18 }
 0x2dc   :  { %v723_v45 = vadd.f32 %v709_v15, %v697_v22  ;;  %v725_v25 = vadd.f32 %v717_v16, %v699_v6 }
 0x2dd   :  { %v726_v8 = vmax.f32 %v722_v23, 0.0  ;;  %v728_v19 = vmax.f32 %v724_v24, 0.0 }
 0x2de   :  { %v727_v26 = vmax.f32 %v723_v45, 0.0  ;;  %v729_v27 = vmax.f32 %v725_v25, 0.0 }
 0x2e0   :  { %859 = vmatprep.mubr.f32.mxu0 %v727_v26  ;;  %929 = vmatprep.mubr.f32.mxu1 %v729_v27 }
 0x2e1   :  { %860 = vmatmul.mubr.f32.vlgmr.msra.gmra.mrb[6].mxu0 %v726_v8  ;;  %930 = vmatmul.mubr.f32.vlgmr.msra.gmra.mrb[6].mxu1 %v728_v19 }
 0x3b4   :  { %v1044_v59 = vpop.f32.mrb[6].mxu0  ;;  %v1079_v46 = vpop.f32.mrb[6].mxu1 }
 0x3b5   :  { %v1045_v55 = vpop.f32.mrb[7].mxu0  ;;  %v1080_v56 = vpop.f32.mrb[7].mxu1 }
 0x3b6   :  { %v1046_v58 = vadd.f32 %v1045_v55, %v1044_v59  ;;  %v1081_v28 = vadd.f32 %v1080_v56, %v1079_v46 }
 0x3b8   :  { %v862_v29 = vadd.f32 %v1046_v58, %v794_v52 }
 0x3ba   :  { %v932_v30 = vadd.f32 %v1081_v28, %v862_v29 }
 0x3bc   :  { %935 = vst [vmem:[%s2258_s8] sm:$0x1] %v932_v30 }

</bundles_post_ra>
